<compile_context>
chip_gen: v7x
topology: tpu7x:2x2x1
jax: 0.10.0
libtpu: 0.0.40
codegen_flags: <defaults>
</compile_context>

<pallas_src>
import jax
import jax.numpy as jnp
from jax.experimental import pallas as pl
from jax.experimental.pallas import tpu as pltpu

LANE = 128            # samples packed per row (TPU lane width)
FEAT = 3              # nn.Linear(3, 1) input features
SUBLANE = 8           # f32 sublane granularity
MAX_TILE_ROWS = 512   # 512 rows * 128 samples = 64K samples (~1 MiB traffic / step)


def linear_kernel(x_ref, w_ref, b_ref, o_ref):
    # x_ref: VMEM (tile_rows, 384) f32 -- 128 samples/row, features interleaved on lanes
    # w_ref: VMEM (384, 128) f32       -- structured weight: w_ref[3j+k, j] = w[k]
    # b_ref: SMEM (1,) f32
    # o_ref: VMEM (tile_rows, 128) f32 -- lane-dense output, 128 samples/row
    y = jnp.dot(
        x_ref[...], w_ref[...],
        preferred_element_type=jnp.float32,
        precision=jax.lax.Precision.HIGHEST,   # keep f32 Linear semantics on the MXU
    )
    o_ref[...] = y + b_ref[0]


def poly_model_forward(x, weight, bias):
    """x: (B, 3), weight: (1, 3), bias: (1,) -> (B, 1) float32."""
    B = x.shape[0]
    if B == 0:
        return jnp.zeros((0, 1), jnp.float32)

    x = x.astype(jnp.float32)

    # ---- padding-aware tiling over 128-sample packed rows ----
    rows = pl.cdiv(B, LANE)                        # packed rows needed
    n_blocks = pl.cdiv(rows, MAX_TILE_ROWS)
    if n_blocks == 1 and rows >= 8 * SUBLANE:      # enough work: split for v7x's 2 TCs
        n_blocks = 2
    tile_rows = pl.cdiv(pl.cdiv(rows, n_blocks), SUBLANE) * SUBLANE
    n_blocks = pl.cdiv(rows, tile_rows)
    rows_pad = n_blocks * tile_rows
    b_pad = rows_pad * LANE

    # Pad the batch only when needed (single extra pass; skipped when aligned).
    if b_pad != B:
        x = jnp.pad(x, ((0, b_pad - B), (0, 0)))

    # Free row-major reshape: row r holds samples [r*128, (r+1)*128); sample j of
    # that row occupies lanes 3j, 3j+1, 3j+2.
    x_r = x.reshape(rows_pad, FEAT * LANE)

    # Structured contraction matrix: W[3j+k, j] = w[k]; all other entries 0.
    w = weight.reshape(FEAT).astype(jnp.float32)
    eye = jnp.eye(LANE, dtype=jnp.float32)
    w_big = (eye[:, None, :] * w[None, :, None]).reshape(FEAT * LANE, LANE)

    b_flat = bias.reshape(1).astype(jnp.float32)

    out = pl.pallas_call(
        linear_kernel,
        out_shape=jax.ShapeDtypeStruct((rows_pad, LANE), jnp.float32),
        grid=(n_blocks,),
        in_specs=[
            pl.BlockSpec((tile_rows, FEAT * LANE), lambda i: (i, 0)),   # x tile
            pl.BlockSpec((FEAT * LANE, LANE), lambda i: (0, 0)),        # resident weight
            pl.BlockSpec(memory_space=pltpu.MemorySpace.SMEM),          # bias scalar
        ],
        out_specs=pl.BlockSpec((tile_rows, LANE), lambda i: (i, 0)),    # lane-dense out
        compiler_params=pltpu.CompilerParams(
            dimension_semantics=("parallel",),
        ),
    )(x_r, w_big, b_flat)

    # Free reshape back to (b_pad, 1); slice off padding only if any was added.
    out_flat = out.reshape(b_pad, 1)
    return out_flat if b_pad == B else out_flat[:B]


def _reference(x, weight, bias):
    # Exact f32 elementwise reference (avoids XLA dot default-precision ambiguity).
    x = x.astype(jnp.float32)
    return (x[:, 0:1] * weight[0, 0]
            + x[:, 1:2] * weight[0, 1]
            + x[:, 2:3] * weight[0, 2]
            + bias[0])


if __name__ == "__main__":
    key = jax.random.PRNGKey(0)
    kx, kw, kb, kx2 = jax.random.split(key, 4)

    # Deterministic parameter init (mimics PyTorch Linear's uniform(-1/sqrt(3), 1/sqrt(3)))
    bound = 1.0 / jnp.sqrt(3.0)
    weight = jax.random.uniform(kw, (1, 3), jnp.float32, -bound, bound)
    bias = jax.random.uniform(kb, (1,), jnp.float32, -bound, bound)

    # Small example batch (single-block path, exercises pad + unpad).
    x = jax.random.normal(kx, (8, 3), jnp.float32)
    out = jax.block_until_ready(poly_model_forward(x, weight, bias))
    ref = _reference(x, weight, bias)
    assert out.shape == (8, 1)
    assert jnp.allclose(out, ref, atol=1e-4, rtol=1e-4), "mismatch vs reference (B=8)"

    # Slightly larger batch exercising the multi-block / megacore-split path.
    x2 = jax.random.normal(kx2, (9000, 3), jnp.float32)
    out2 = jax.block_until_ready(poly_model_forward(x2, weight, bias))
    ref2 = _reference(x2, weight, bias)
    assert out2.shape == (9000, 1)
    assert jnp.allclose(out2, ref2, atol=1e-4, rtol=1e-4), "mismatch vs reference (B=9000)"

    print("KERNEL_OK")
</pallas_src>

<mosaic_0001>
module attributes {stable_mosaic.version = 11 : i64} {
  func.func @linear_kernel(%arg0: i32, %arg1: memref<8x384xf32, #tpu.memory_space<vmem>>, %arg2: memref<384x128xf32, #tpu.memory_space<vmem>>, %arg3: memref<1xf32, #tpu.memory_space<smem>>, %arg4: memref<8x128xf32, #tpu.memory_space<vmem>>) attributes {dimension_semantics = [#tpu.dimension_semantics<parallel>], iteration_bounds = array<i64: 1>, scalar_prefetch = 0 : i64, scratch_operands = 0 : i64, tpu.core_type = #tpu.core_type<tc>, window_params = [{transform_indices = @transform_0, window_bounds = array<i64: 8, 384>}, {pipeline_mode = #tpu.pipeline_mode<synchronous>, transform_indices = @transform_1, window_bounds = array<i64: 384, 128>}, {transform_indices = @transform_2, window_bounds = array<i64: 1>}, {transform_indices = @transform_3, window_bounds = array<i64: 8, 128>}]} {
    %c0 = arith.constant 0 : index
    %c0_0 = arith.constant 0 : index
    %0 = vector.load %arg1[%c0, %c0_0] : memref<8x384xf32, #tpu.memory_space<vmem>>, vector<8x384xf32>
    %c0_1 = arith.constant 0 : index
    %c0_2 = arith.constant 0 : index
    %1 = vector.load %arg2[%c0_1, %c0_2] : memref<384x128xf32, #tpu.memory_space<vmem>>, vector<384x128xf32>
    %cst = arith.constant dense<0.000000e+00> : vector<8x128xf32>
    %2 = tpu.matmul %0, %1, %cst {dimension_numbers = #tpu.dot_dimension_numbers<[1], [0], [0], [1], [0, 0, 1, 1], [], []>, precision = #tpu.contract_precision<fp32>} : vector<8x384xf32>, vector<384x128xf32>, vector<8x128xf32> -> vector<8x128xf32>
    %c0_3 = arith.constant 0 : index
    %3 = memref.load %arg3[%c0_3] : memref<1xf32, #tpu.memory_space<smem>>
    %4 = vector.broadcast %3 : f32 to vector<8x128xf32>
    %5 = arith.addf %2, %4 : vector<8x128xf32>
    %c0_4 = arith.constant 0 : index
    %c0_5 = arith.constant 0 : index
    %6 = vector.load %arg4[%c0_4, %c0_5] : memref<8x128xf32, #tpu.memory_space<vmem>>, vector<8x128xf32>
    tpu.vector_store %arg4[%c0_4, %c0_5], %5 {strides = array<i32>} : memref<8x128xf32, #tpu.memory_space<vmem>>, vector<8x128xf32>,
    return
  }
  func.func @transform_0(%arg0: i32) -> (i32, i32) {
    %c0_i32 = arith.constant 0 : i32
    %c0_i32_0 = arith.constant 0 : i32
    return %arg0, %c0_i32 : i32, i32
  }
  func.func @transform_1(%arg0: i32) -> (i32, i32) {
    %c0_i32 = arith.constant 0 : i32
    %c0_i32_0 = arith.constant 0 : i32
    %c0_i32_1 = arith.constant 0 : i32
    return %c0_i32, %c0_i32_0 : i32, i32
  }
  func.func @transform_2(%arg0: i32) -> i32 {
    %c0_i32 = arith.constant 0 : i32
    %c0_i32_0 = arith.constant 0 : i32
    return %c0_i32 : i32
  }
  func.func @transform_3(%arg0: i32) -> (i32, i32) {
    %c0_i32 = arith.constant 0 : i32
    %c0_i32_0 = arith.constant 0 : i32
    return %arg0, %c0_i32 : i32, i32
  }
}

</mosaic_0001>

<bundles_post_ra>
// kernel: tpu_custom_call.1
= control target key start
LH: loop header
LB: loop body
LE: loop exit
PB: predicated region body
PF: predicated region fallthrough
CT: control target
= control target key end

     0   :  { %9 = vsyncpa [#allocation4], 0  ;;  %s3363_s0 = inlined_call_operand.hbm [shape: f32[8,384], index: 0, kind: input, shape index: {}]   ;;  %s3364_s1 = inlined_call_operand.hbm [shape: f32[384,128], index: 1, kind: input, shape index: {}]   ;;  %s3365_s2 = inlined_call_operand.<no memory space> [shape: f32[1], index: 2, kind: input, shape index: {}]   ;;  %s3366_s3 = inlined_call_operand.hbm [shape: f32[8,128], index: 3, kind: output, shape index: {}]  }
   0x1   :  { %10 = vsyncpa [#allocation7], 0 }
   0x2   :  { %11 = vsyncpa [#allocation5], 0  ;;  %s2564_s12 = smov [#allocation3]   ;;  %s2565_s14 = smov [#allocation6]  }
   0x3   :  { %s18_s13 = sshll.u32 %s2564_s12, 4  ;;  %s27_s15 = sshll.u32 %s2565_s14, 4  ;;  %s19_s13 = int_to_ptr.vmem [resolvable:$true] %s18_s13  ;;  %s2592_s15 = int_to_ptr.vmem [resolvable:$true] %s27_s15 }
   0x4   :  { %s2492_s18 = scalar_lea.hbm %s3363_s0, 384 }
   0x5   :  { %p2493_p0 = scmp.ne.s32.totalorder %s3363_s0, %s2492_s18  ;;  %p2496_p1 = scmp.lt.u32.totalorder %s2492_s18, %s3363_s0 }
   0x7   :  { %p2498_p2 = pnand %p2496_p1, %p2493_p0 }
   0x9   :  { %2501 = shalt.err (!%p2498_p2)
}
   0xa   :  { %s2502_s23 = scalar_lea.vmem %s19_s13, 384  ;;  %p2507_p4 = scmp.lt.s32.totalorder %s19_s13, %s19_s13 }
   0xb   :  { %p2503_p3 = scmp.ne.s32.totalorder %s19_s13, %s2502_s23  ;;  %p2508_p5 = scmp.lt.s32.totalorder %s2502_s23, %s2502_s23 }
   0xd   :  { %p2509_p6 = por %p2508_p5, %p2507_p4 }
   0xf   :  { %p2510_p7 = pnand %p2509_p6, %p2503_p3 }
  0x11   :  { %2513 = shalt.err (!%p2510_p7)
}
  0x12   :  { %21 = dma.hbm_to_vmem [thread:$0]  %s3363_s0, 384, %s19_s13, [#allocation4]  }
  0x13   :  { %s2514_s28 = scalar_lea.hbm %s3364_s1, 6144 }
  0x14   :  { %p2515_p8 = scmp.ne.s32.totalorder %s3364_s1, %s2514_s28  ;;  %p2518_p9 = scmp.lt.u32.totalorder %s2514_s28, %s3364_s1 }
  0x16   :  { %p2520_p10 = pnand %p2518_p9, %p2515_p8 }
  0x18   :  { %2523 = shalt.err (!%p2520_p10)
}
  0x19   :  { %s2524_s6 = scalar_lea.vmem %s2592_s15, 6144  ;;  %p2529_p12 = scmp.lt.s32.totalorder %s2592_s15, %s2592_s15 }
  0x1a   :  { %p2525_p11 = scmp.ne.s32.totalorder %s2592_s15, %s2524_s6  ;;  %p2530_p13 = scmp.lt.s32.totalorder %s2524_s6, %s2524_s6 }
  0x1c   :  { %p2531_p0 = por %p2530_p13, %p2529_p12 }
  0x1e   :  { %p2532_p1 = pnand %p2531_p0, %p2525_p11 }
  0x20   :  { %2535 = shalt.err (!%p2532_p1)
}
  0x21   :  { %s2566_s0 = smov 128   ;;  %s2567_s7 = smov 8  }
  0x22   :  { %33 = dma.hbm_to_vmem [thread:$0]  %s3364_s1, 6144, %s2592_s15, [#allocation7], %s2566_s0, %s2566_s0, %s2567_s7  }
  0x23   :  { %2558 = dma.done.wait [#allocation4], 384  }
  0x24   :  { %2559 = vsyncadd [#allocation4], 4294966912 }
  0x25   :  { %2560 = dma.done.wait [#allocation7], 6144  }
  0x26   :  { %2561 = vsyncadd [#allocation7], 4294961152  ;;  %v3373_v0 = vmov 0.0|0.0   ;;  %vm2569_vm0 = vmmov 0   ;;  %v3367_v1 = vmov 0.0   ;;  %v61_v2 = vld [vmem:[#allocation6 + $0x80] sm:$0xff] }
  0x27   :  { %2329 = vmatprep.subr.bf16.mxu0 %v3373_v0  ;;  %1959 = vmatprep.mubr.msk.f32.mxu0 %vm2569_vm0, %v3367_v1  ;;  %v62_v3 = vld [vmem:[#allocation6 + $0x88] sm:$0xff]  ;;  %v77_v4 = vld [vmem:[#allocation6 + $0x100] sm:$0xff]  ;;  %v144_v5 = vand.u32 4294901760, %v61_v2  ;;  %v63_v14 = vld [vmem:[#allocation6 + $0x90] sm:$0xff] }
  0x28   :  { %v147_v6 = vand.u32 4294901760, %v62_v3  ;;  %v78_v7 = vld [vmem:[#allocation6 + $0x108] sm:$0xff]  ;;  %v958_v8 = vand.u32 4294901760, %v77_v4  ;;  %v45_v9 = vld [vmem:[#allocation6] sm:$0xff]  ;;  %v64_v15 = vld [vmem:[#allocation6 + $0x98] sm:$0xff]  ;;  %v150_v30 = vand.u32 4294901760, %v63_v14 }
  0x29   :  { %v46_v10 = vld [vmem:[#allocation6 + $0x8] sm:$0xff]  ;;  %v961_v11 = vand.u32 4294901760, %v78_v7  ;;  %v96_v12 = vand.u32 4294901760, %v45_v9  ;;  %v79_v16 = vld [vmem:[#allocation6 + $0x110] sm:$0xff]  ;;  %v2628_v18 = vsub.f32 %v61_v2, %v144_v5  ;;  %v80_v21 = vld [vmem:[#allocation6 + $0x118] sm:$0xff]  ;;  %v153_v31 = vand.u32 4294901760, %v64_v15 }
  0x2a   :  { %v99_v13 = vand.u32 4294901760, %v46_v10  ;;  %v2626_v17 = vpack.c.bf16 %v147_v6, %v144_v5  ;;  %v2630_v19 = vsub.f32 %v62_v3, %v147_v6  ;;  %v2632_v20 = vsub.f32 %v77_v4, %v958_v8  ;;  %v47_v22 = vld [vmem:[#allocation6 + $0x10] sm:$0xff]  ;;  %v48_v23 = vld [vmem:[#allocation6 + $0x18] sm:$0xff]  ;;  %v65_v28 = vld [vmem:[#allocation6 + $0xa0] sm:$0xff] }
  0x2b   :  { %v2634_v24 = vpack.c.bf16 %v961_v11, %v958_v8  ;;  %v2636_v25 = vsub.f32 %v78_v7, %v961_v11  ;;  %v2640_v27 = vsub.f32 %v45_v9, %v96_v12  ;;  %v964_v32 = vand.u32 4294901760, %v79_v16  ;;  %v66_v33 = vld [vmem:[#allocation6 + $0xa8] sm:$0xff]  ;;  %v81_v38 = vld [vmem:[#allocation6 + $0x120] sm:$0xff]  ;;  %v67_v46 = vld [vmem:[#allocation6 + $0xb0] sm:$0xff] }
  0x2c   :  { %3491 = vst [vmem:[#allocation12_spill] sm:$0xff] %v2626_v17  ;;  %3492 = vst [vmem:[#allocation13_spill] sm:$0xff] %v2630_v19  ;;  %v2638_v26 = vpack.c.bf16 %v99_v13, %v96_v12  ;;  %2138 = vmatprep.subr.bf16.mxu1 %v2626_v17  ;;  %v2643_v29 = vsub.f32 %v46_v10, %v99_v13  ;;  %v967_v34 = vand.u32 4294901760, %v80_v21  ;;  %v102_v35 = vand.u32 4294901760, %v47_v22  ;;  %v82_v39 = vld [vmem:[#allocation6 + $0x128] sm:$0xff]  ;;  %v49_v44 = vld [vmem:[#allocation6 + $0x20] sm:$0xff] }
  0x2d   :  { %3493 = vst [vmem:[#allocation14_spill] sm:$0xff] %v2632_v20  ;;  %3494 = vst [vmem:[#allocation15_spill] sm:$0xff] %v2634_v24  ;;  %2331 = vmatpush3.bf16.msra.mxu0 %v2634_v24  ;;  %v105_v36 = vand.u32 4294901760, %v48_v23  ;;  %v156_v37 = vand.u32 4294901760, %v65_v28  ;;  %v2648_v40 = vpack.c.bf16 %v153_v31, %v150_v30  ;;  %v2650_v41 = vsub.f32 %v63_v14, %v150_v30  ;;  %v50_v45 = vld [vmem:[#allocation6 + $0x28] sm:$0xff]  ;;  %v68_v51 = vld [vmem:[#allocation6 + $0xb8] sm:$0xff] }
  0x2e   :  { %3495 = vst [vmem:[#allocation16_spill] sm:$0xff] %v2636_v25  ;;  %3496 = vst [vmem:[#allocation17_spill] sm:$0xff] %v2638_v26  ;;  %2140 = vmatpush3.bf16.msra.mxu1 %v2638_v26  ;;  %2332 = vmatprep.subr.bf16.mxu0 %v3373_v0  ;;  %v2652_v42 = vsub.f32 %v64_v15, %v153_v31  ;;  %v2654_v43 = vsub.f32 %v79_v16, %v964_v32  ;;  %v159_v53 = vand.u32 4294901760, %v66_v33  ;;  %v83_v60 = vld [vmem:[#allocation6 + $0x130] sm:$0xff]  ;;  %v84_v61 = vld [vmem:[#allocation6 + $0x138] sm:$0xff] }
  0x2f   :  { %3497 = vst [vmem:[#allocation18_spill] sm:$0xff] %v2648_v40  ;;  %v2656_v47 = vpack.c.bf16 %v967_v34, %v964_v32  ;;  %v2658_v48 = vsub.f32 %v80_v21, %v967_v34  ;;  %v2660_v49 = vpack.c.bf16 %v105_v36, %v102_v35  ;;  %v2662_v50 = vsub.f32 %v47_v22, %v102_v35  ;;  %v51_v4 = vld [vmem:[#allocation6 + $0x30] sm:$0xff]  ;;  %v52_v5 = vld [vmem:[#allocation6 + $0x38] sm:$0xff]  ;;  %v69_v6 = vld [vmem:[#allocation6 + $0xc0] sm:$0xff] }
  0x30   :  { %2142 = vmatprep.subr.bf16.mxu1 %v2648_v40  ;;  %v2665_v52 = vsub.f32 %v48_v23, %v105_v36  ;;  %v2667_v54 = vsub.f32 %v65_v28, %v156_v37  ;;  %v970_v55 = vand.u32 4294901760, %v81_v38  ;;  %v973_v56 = vand.u32 4294901760, %v82_v39  ;;  %v70_v11 = vld [vmem:[#allocation6 + $0xc8] sm:$0xff]  ;;  %v85_v12 = vld [vmem:[#allocation6 + $0x140] sm:$0xff]  ;;  %v92_v40 = vld [vmem:[#allocation6 + $0x178] sm:$0xff] }
  0x31   :  { %3498 = vst [vmem:[#allocation19_spill] sm:$0xff] %v2656_v47  ;;  %3499 = vst [vmem:[#allocation20_spill] sm:$0xff] %v2660_v49  ;;  %2334 = vmatpush3.bf16.msra.mxu0 %v2656_v47  ;;  %v108_v57 = vand.u32 4294901760, %v49_v44  ;;  %v111_v58 = vand.u32 4294901760, %v50_v45  ;;  %v162_v59 = vand.u32 4294901760, %v67_v46  ;;  %v2672_v62 = vpack.c.bf16 %v159_v53, %v156_v37  ;;  %v86_v13 = vld [vmem:[#allocation6 + $0x148] sm:$0xff] }
  0x32   :  { %2144 = vmatpush3.bf16.msra.mxu1 %v2660_v49  ;;  %2335 = vmatprep.subr.bf16.mxu0 %v3373_v0  ;;  %v2674_v63 = vsub.f32 %v66_v33, %v159_v53  ;;  %v2676_v2 = vsub.f32 %v81_v38, %v970_v55  ;;  %v165_v3 = vand.u32 4294901760, %v68_v51  ;;  %v2678_v7 = vpack.c.bf16 %v973_v56, %v970_v55  ;;  %v53_v35 = vld [vmem:[#allocation6 + $0x40] sm:$0xff]  ;;  %v75_v47 = vld [vmem:[#allocation6 + $0xf0] sm:$0xff] }
  0x33   :  { %3500 = vst [vmem:[#allocation21_spill] sm:$0xff] %v2672_v62  ;;  %v2680_v8 = vsub.f32 %v82_v39, %v973_v56  ;;  %v2682_v9 = vpack.c.bf16 %v111_v58, %v108_v57  ;;  %v2684_v10 = vsub.f32 %v49_v44, %v108_v57  ;;  %2146 = vmatprep.subr.bf16.mxu1 %v2672_v62  ;;  %v976_v22 = vand.u32 4294901760, %v83_v60  ;;  %v54_v44 = vld [vmem:[#allocation6 + $0x48] sm:$0xff]  ;;  %v87_v57 = vld [vmem:[#allocation6 + $0x150] sm:$0xff]  ;;  %v73_v1 = vld [vmem:[#allocation6 + $0xe0] sm:$0xff] }
  0x34   :  { %3501 = vst [vmem:[#allocation22_spill] sm:$0xff] %v2678_v7  ;;  %v2687_v14 = vsub.f32 %v50_v45, %v111_v58  ;;  %v2689_v15 = vpack.c.bf16 %v165_v3, %v162_v59  ;;  %v2691_v16 = vsub.f32 %v67_v46, %v162_v59  ;;  %v2693_v21 = vsub.f32 %v68_v51, %v165_v3  ;;  %v71_v45 = vld [vmem:[#allocation6 + $0xd0] sm:$0xff]  ;;  %v72_v46 = vld [vmem:[#allocation6 + $0xd8] sm:$0xff] }
  0x35   :  { %3502 = vst [vmem:[#allocation23_spill] sm:$0xff] %v2682_v9  ;;  %2337 = vmatpush3.bf16.msra.mxu0 %v2678_v7  ;;  %v979_v23 = vand.u32 4294901760, %v84_v61  ;;  %v114_v28 = vand.u32 4294901760, %v51_v4  ;;  %v117_v30 = vand.u32 4294901760, %v52_v5  ;;  %v168_v31 = vand.u32 4294901760, %v69_v6  ;;  %v88_v58 = vld [vmem:[#allocation6 + $0x158] sm:$0xff] }
  0x36   :  { %3503 = vst [vmem:[#allocation24_spill] sm:$0xff] %v2689_v15  ;;  %2148 = vmatpush3.bf16.msra.mxu1 %v2682_v9  ;;  %2338 = vmatprep.subr.bf16.mxu0 %v3373_v0  ;;  %v171_v32 = vand.u32 4294901760, %v70_v11  ;;  %v982_v33 = vand.u32 4294901760, %v85_v12  ;;  %v985_v34 = vand.u32 4294901760, %v86_v13  ;;  %v2701_v37 = vsub.f32 %v83_v60, %v976_v22  ;;  %v55_v59 = vld [vmem:[#allocation6 + $0x50] sm:$0xff] }
  0x37   :  { %2150 = vmatprep.subr.bf16.mxu1 %v2689_v15  ;;  %v2699_v36 = vpack.c.bf16 %v979_v23, %v976_v22  ;;  %v2703_v38 = vsub.f32 %v84_v61, %v979_v23  ;;  %v2705_v39 = vpack.c.bf16 %v117_v30, %v114_v28  ;;  %v2707_v51 = vsub.f32 %v51_v4, %v114_v28  ;;  %v56_v28 = vld [vmem:[#allocation6 + $0x58] sm:$0xff]  ;;  %v58_v15 = vld [vmem:[#allocation6 + $0x68] sm:$0xff]  ;;  %v59_v26 = vld [vmem:[#allocation6 + $0x70] sm:$0xff] }
  0x38   :  { %v2709_v53 = vsub.f32 %v52_v5, %v117_v30  ;;  %v2711_v55 = vpack.c.bf16 %v171_v32, %v168_v31  ;;  %v2713_v56 = vsub.f32 %v69_v6, %v168_v31  ;;  %v2717_v60 = vsub.f32 %v70_v11, %v171_v32 }
  0x39   :  { %3504 = vst [vmem:[#allocation25_spill] sm:$0xff] %v2699_v36  ;;  %3505 = vst [vmem:[#allocation26_spill] sm:$0xff] %v2705_v39  ;;  %2340 = vmatpush3.bf16.msra.mxu0 %v2699_v36  ;;  %v2719_v61 = vpack.c.bf16 %v985_v34, %v982_v33  ;;  %v2721_v3 = vsub.f32 %v85_v12, %v982_v33  ;;  %v120_v4 = vand.u32 4294901760, %v53_v35  ;;  %v123_v6 = vand.u32 4294901760, %v54_v44  ;;  %v89_v12 = vld [vmem:[#allocation6 + $0x160] sm:$0xff] }
  0x3a   :  { %3506 = vst [vmem:[#allocation27_spill] sm:$0xff] %v2711_v55  ;;  %2152 = vmatpush3.bf16.msra.mxu1 %v2705_v39  ;;  %2341 = vmatprep.subr.bf16.mxu0 %v3373_v0  ;;  %v2725_v5 = vsub.f32 %v86_v13, %v985_v34  ;;  %v174_v22 = vand.u32 4294901760, %v71_v45  ;;  %v177_v23 = vand.u32 4294901760, %v72_v46  ;;  %v988_v31 = vand.u32 4294901760, %v87_v57  ;;  %v74_v39 = vld [vmem:[#allocation6 + $0xe8] sm:$0xff] }
  0x3b   :  { %3507 = vst [vmem:[#allocation28_spill] sm:$0xff] %v2719_v61  ;;  %2154 = vmatprep.subr.bf16.mxu1 %v2711_v55  ;;  %v2727_v30 = vsub.f32 %v53_v35, %v120_v4  ;;  %v991_v11 = vand.u32 4294901760, %v88_v58  ;;  %v126_v32 = vand.u32 4294901760, %v55_v59  ;;  %v2729_v33 = vpack.c.bf16 %v123_v6, %v120_v4  ;;  %v90_v34 = vld [vmem:[#allocation6 + $0x168] sm:$0xff]  ;;  %v57_v55 = vld [vmem:[#allocation6 + $0x60] sm:$0xff] }
  0x3c   :  { %v2731_v36 = vsub.f32 %v54_v44, %v123_v6  ;;  %v2733_v0 = vpack.c.bf16 %v177_v23, %v174_v22  ;;  %v2735_v13 = vsub.f32 %v71_v45, %v174_v22  ;;  %v2738_v35 = vsub.f32 %v72_v46, %v177_v23 }
  0x3d   :  { %3508 = vst [vmem:[#allocation29_spill] sm:$0xff] %v2729_v33  ;;  %2343 = vmatpush3.bf16.msra.mxu0 %v2719_v61  ;;  %v2740_v9 = vpack.c.bf16 %v991_v11, %v988_v31  ;;  %v2742_v7 = vsub.f32 %v87_v57, %v988_v31  ;;  %v2744_v62 = vsub.f32 %v88_v58, %v991_v11  ;;  %v3511_v44 = vmov 0.0|0.0   ;;  %v76_v57 = vld [vmem:[#allocation6 + $0xf8] sm:$0xff] }
  0x3e   :  { %3509 = vst [vmem:[#allocation30_spill] sm:$0xff] %v2733_v0  ;;  %2156 = vmatpush3.bf16.msra.mxu1 %v2729_v33  ;;  %2344 = vmatprep.subr.bf16.mxu0 %v3511_v44  ;;  %v129_v4 = vand.u32 4294901760, %v56_v28  ;;  %v2748_v45 = vsub.f32 %v55_v59, %v126_v32  ;;  %v180_v6 = vand.u32 4294901760, %v73_v1  ;;  %v183_v22 = vand.u32 4294901760, %v74_v39  ;;  %v91_v59 = vld [vmem:[#allocation6 + $0x170] sm:$0xff] }
  0x3f   :  { %3510 = vst [vmem:[#allocation31_spill] sm:$0xff] %v2740_v9  ;;  %2158 = vmatprep.subr.bf16.mxu1 %v2733_v0  ;;  %v994_v61 = vand.u32 4294901760, %v89_v12  ;;  %v997_v46 = vand.u32 4294901760, %v90_v34  ;;  %v132_v23 = vand.u32 4294901760, %v57_v55  ;;  %v135_v49 = vand.u32 4294901760, %v58_v15 }
  0x40   :  { %3512 = vst [vmem:[#allocation32_spill] sm:$0xff] %v2748_v45  ;;  %v2751_v31 = vpack.c.bf16 %v129_v4, %v126_v32  ;;  %v2753_v58 = vsub.f32 %v56_v28, %v129_v4  ;;  %v2755_v11 = vpack.c.bf16 %v183_v22, %v180_v6  ;;  %v2757_v33 = vsub.f32 %v73_v1, %v180_v6  ;;  %v60_v32 = vld [vmem:[#allocation6 + $0x78] sm:$0xff]  ;;  %v43_v28 = vld [vmem:[#allocation3 + $0x8] sm:$0xff]  ;;  %v42_v4 = vld [vmem:[#allocation3] sm:$0xff] }
  0x41   :  { %2346 = vmatpush3.bf16.msra.mxu0 %v2740_v9  ;;  %v2760_v0 = vsub.f32 %v74_v39, %v183_v22  ;;  %v2762_v24 = vpack.c.bf16 %v997_v46, %v994_v61  ;;  %v2764_v17 = vsub.f32 %v89_v12, %v994_v61  ;;  %v2766_v45 = vsub.f32 %v90_v34, %v997_v46 }
  0x42   :  { %3513 = vst [vmem:[#allocation33_spill] sm:$0xff] %v2751_v31  ;;  %3514 = vst [vmem:[#allocation34_spill] sm:$0xff] %v2755_v11  ;;  %2160 = vmatpush3.bf16.msra.mxu1 %v2751_v31  ;;  %2347 = vmatprep.subr.bf16.mxu0 %v3511_v44  ;;  %v2770_v1 = vpack.c.bf16 %v135_v49, %v132_v23  ;;  %v2772_v6 = vsub.f32 %v57_v55, %v132_v23  ;;  %v186_v39 = vand.u32 4294901760, %v75_v47 }
  0x43   :  { %3515 = vst [vmem:[#allocation35_spill] sm:$0xff] %v2762_v24  ;;  %3516 = vst [vmem:[#allocation36_spill] sm:$0xff] %v2764_v17  ;;  %v2774_v9 = vsub.f32 %v58_v15, %v135_v49  ;;  %2162 = vmatprep.subr.bf16.mxu1 %v2755_v11  ;;  %v189_v61 = vand.u32 4294901760, %v76_v57  ;;  %v1000_v12 = vand.u32 4294901760, %v91_v59  ;;  %v1003_v34 = vand.u32 4294901760, %v92_v40  ;;  %v44_v11 = vld [vmem:[#allocation3 + $0x10] sm:$0xff] }
  0x44   :  { %3517 = vst [vmem:[#allocation37_spill] sm:$0xff] %v2766_v45  ;;  %3518 = vst [vmem:[#allocation38_spill] sm:$0xff] %v2770_v1  ;;  %v138_v22 = vand.u32 4294901760, %v59_v26  ;;  %v2777_v46 = vsub.f32 %v75_v47, %v186_v39  ;;  %v141_v45 = vand.u32 4294901760, %v60_v32  ;;  %v2779_v17 = vand.u32 4294901760, %v43_v28 }
  0x45   :  { %3519 = vst [vmem:[#allocation39_spill] sm:$0xff] %v2772_v6  ;;  %3520 = vst [vmem:[#allocation40_spill] sm:$0xff] %v2774_v9  ;;  %v2781_v31 = vand.u32 4294901760, %v42_v4  ;;  %2349 = vmatpush3.bf16.msra.mxu0 %v2762_v24  ;;  %v2784_v55 = vpack.c.bf16 %v189_v61, %v186_v39  ;;  %v2786_v49 = vsub.f32 %v76_v57, %v189_v61  ;;  %v3414_v39 = vand.u32 4294901760, %v2628_v18 }
  0x46   :  { %3521 = vst [vmem:[#allocation41_spill] sm:$0xff] %v2777_v46  ;;  %3522 = vst [vmem:[#allocation42_spill] sm:$0xff] %v2779_v17  ;;  %v2788_v15 = vpack.c.bf16 %v1003_v34, %v1000_v12  ;;  %v2790_v23 = vsub.f32 %v91_v59, %v1000_v12  ;;  %2164 = vmatpush3.bf16.msra.mxu1 %v2770_v1  ;;  %2350 = vmatprep.subr.bf16.mxu0 %v3511_v44  ;;  %v3417_v12 = vand.u32 4294901760, %v2630_v19 }
  0x47   :  { %3523 = vst [vmem:[#allocation43_spill] sm:$0xff] %v2781_v31  ;;  %3524 = vst [vmem:[#allocation44_spill] sm:$0xff] %v2784_v55  ;;  %v2794_v47 = vsub.f32 %v92_v40, %v1003_v34  ;;  %v2796_v46 = vpack.c.bf16 %v141_v45, %v138_v22  ;;  %v2798_v9 = vsub.f32 %v59_v26, %v138_v22  ;;  %2166 = vmatprep.subr.bf16.mxu1 %v2784_v55 }
  0x48   :  { %3525 = vst [vmem:[#allocation45_spill] sm:$0xff] %v2788_v15  ;;  %v2802_v57 = vsub.f32 %v60_v32, %v141_v45  ;;  %v2805_v59 = vsub.f32 %v43_v28, %v2779_v17  ;;  %v2808_v61 = vsub.f32 %v42_v4, %v2781_v31  ;;  %v323_v40 = vsub.f32 %v2628_v18, %v3414_v39 }
  0x49   :  { %3526 = vst [vmem:[#allocation46_spill] sm:$0xff] %v2794_v47  ;;  %3527 = vst [vmem:[#allocation47_spill] sm:$0xff] %v2796_v46  ;;  %v2814_v26 = vand.u32 4294901760, %v44_v11  ;;  %2352 = vmatpush3.bf16.msra.mxu0 %v2788_v15  ;;  %v330_v28 = vsub.f32 %v2630_v19, %v3417_v12  ;;  %v3531_v22 = vand.u32 4294901760, %v2632_v20  ;;  %v3532_v32 = vand.u32 4294901760, %v2636_v25 }
  0x4a   :  { %3528 = vst [vmem:[#allocation48_spill] sm:$0xff] %v2808_v61  ;;  %2168 = vmatpush3.bf16.msra.mxu1 %v2796_v46  ;;  %2353 = vmatprep.subr.bf16.mxu0 %v3511_v44  ;;  %v324_v39 = vand.u32 4294901760, %v323_v40  ;;  %v3533_v12 = vand.u32 4294901760, %v2805_v59  ;;  %v3534_v46 = vand.u32 4294901760, %v2808_v61 }
  0x4b   :  { %3529 = vst [vmem:[#allocation49_spill] sm:$0xff] %v2814_v26  ;;  %v2828_v34 = vsub.f32 %v44_v11, %v2814_v26  ;;  %v1052_v45 = vsub.f32 %v2632_v20, %v3531_v22  ;;  %v1059_v15 = vsub.f32 %v2636_v25, %v3532_v32  ;;  %v331_v40 = vand.u32 4294901760, %v330_v28 }
  0x4c   :  { %v194_v4 = vsub.f32 %v2805_v59, %v3533_v12  ;;  %v200_v55 = vsub.f32 %v2808_v61, %v3534_v46  ;;  %v3535_v11 = vand.u32 4294901760, %v2640_v27  ;;  %v3440_v26 = vand.u32 4294901760, %v2643_v29 }
  0x4d   :  { %3530 = vst [vmem:[#allocation50_spill] sm:$0xff] %v2828_v34  ;;  %v3436_v24 = vand.u32 4294901760, %v2828_v34  ;;  %v1053_v22 = vand.u32 4294901760, %v1052_v45  ;;  %v1060_v31 = vand.u32 4294901760, %v1059_v15  ;;  %v2169_v20 = vpack.c.bf16 %v331_v40, %v324_v39 }
  0x4e   :  { %v211_v1 = vsub.f32 %v2640_v27, %v3535_v11  ;;  %v195_v32 = vand.u32 4294901760, %v194_v4  ;;  %v201_v25 = vand.u32 4294901760, %v200_v55  ;;  %v218_v28 = vsub.f32 %v2643_v29, %v3440_v26 }
  0x4f   :  { %v1041_v12 = vsub.f32 %v2828_v34, %v3436_v24  ;;  %v2354_v46 = vpack.c.bf16 %v1060_v31, %v1053_v22  ;;  %v3439_v11 = vand.u32 4294901760, %v2650_v41  ;;  %2170 = vmatprep.subr.bf16.mxu1 %v2169_v20  ;;  %v3437_v15 = vand.u32 4294901760, %v2652_v42 }
  0x50   :  { %v212_v19 = vand.u32 4294901760, %v211_v1  ;;  %196 = vmatprep.mubr.f32.mxu1 %v195_v32  ;;  %v3438_v45 = vand.u32 4294901760, %v2654_v43  ;;  %v3441_v55 = vand.u32 4294901760, %v2658_v48  ;;  %v3451_v1 = vand.u32 4294901760, %v2662_v50 }
  0x51   :  { %202 = vmatmul.mubr.f32.vlgmr.msra.gmra.mrb[0].mxu1 %v201_v25  ;;  %v1042_v39 = vand.u32 4294901760, %v1041_v12  ;;  %v219_v4 = vand.u32 4294901760, %v218_v28  ;;  %v337_v31 = vsub.f32 %v2650_v41, %v3439_v11  ;;  %v3444_v40 = vand.u32 4294901760, %v2665_v52 }
  0x52   :  { %v344_v20 = vsub.f32 %v2652_v42, %v3437_v15  ;;  %v1066_v22 = vsub.f32 %v2654_v43, %v3438_v45  ;;  %v1073_v25 = vsub.f32 %v2658_v48, %v3441_v55  ;;  %v225_v32 = vsub.f32 %v2662_v50, %v3451_v1  ;;  %432 = vmatprep.mubr.f32.mxu1 %v2779_v17 }
  0x53   :  { %1960 = vmatmul.mubr.f32.vlgmr.msra.gmra.mrb[0].mxu0 %v1042_v39  ;;  %v2171_v12 = vpack.c.bf16 %v219_v4, %v212_v19  ;;  %v338_v28 = vand.u32 4294901760, %v337_v31  ;;  %v232_v24 = vsub.f32 %v2665_v52, %v3444_v40  ;;  %v3449_v15 = vand.u32 4294901760, %v2667_v54 }
  0x54   :  { %2355 = vmatpush3.bf16.msra.mxu0 %v2354_v46  ;;  %v345_v45 = vand.u32 4294901760, %v344_v20  ;;  %v1067_v11 = vand.u32 4294901760, %v1066_v22  ;;  %v1074_v26 = vand.u32 4294901760, %v1073_v25  ;;  %v226_v55 = vand.u32 4294901760, %v225_v32 }
  0x55   :  { %v3536_v61 = vmov 0.0   ;;  %2172 = vmatpush3.bf16.msra.mxu1 %v2171_v12  ;;  %2356 = vmatprep.subr.bf16.mxu0 %v3511_v44  ;;  %v233_v39 = vand.u32 4294901760, %v232_v24  ;;  %v351_v19 = vsub.f32 %v2667_v54, %v3449_v15  ;;  %v3448_v4 = vand.u32 4294901760, %v2674_v63 }
  0x56   :  { %1994 = vmatprep.mubr.msk.f32.mxu0 %vm2569_vm0, %v3536_v61  ;;  %v3445_v31 = vand.u32 4294901760, %v2676_v2  ;;  %v2173_v46 = vpack.c.bf16 %v345_v45, %v338_v28  ;;  %v2357_v20 = vpack.c.bf16 %v1074_v26, %v1067_v11  ;;  %v3446_v22 = vand.u32 4294901760, %v2680_v8 }
  0x57   :  { %v3447_v25 = vand.u32 4294901760, %v2684_v10  ;;  %v2175_v32 = vpack.c.bf16 %v233_v39, %v226_v55  ;;  %v352_v40 = vand.u32 4294901760, %v351_v19  ;;  %v358_v24 = vsub.f32 %v2674_v63, %v3448_v4 }
  0x58   :  { %v1080_v12 = vsub.f32 %v2676_v2, %v3445_v31  ;;  %2174 = vmatprep.subr.bf16.mxu1 %v2173_v46  ;;  %2358 = vmatpush3.bf16.msra.mxu0 %v2357_v20  ;;  %v1087_v26 = vsub.f32 %v2680_v8, %v3446_v22  ;;  %v3450_v45 = vand.u32 4294901760, %v2687_v14  ;;  %v3470_v55 = vand.u32 4294901760, %v2691_v16 }
  0x59   :  { %v239_v11 = vsub.f32 %v2684_v10, %v3447_v25  ;;  %2176 = vmatpush3.bf16.msra.mxu1 %v2175_v32  ;;  %2359 = vmatprep.subr.bf16.mxu0 %v3511_v44  ;;  %v359_v28 = vand.u32 4294901760, %v358_v24  ;;  %v3454_v19 = vand.u32 4294901760, %v2693_v21  ;;  %v3455_v46 = vand.u32 4294901760, %v2701_v37 }
  0x5a   :  { %v1081_v39 = vand.u32 4294901760, %v1080_v12  ;;  %v1088_v20 = vand.u32 4294901760, %v1087_v26  ;;  %v246_v22 = vsub.f32 %v2687_v14, %v3450_v45  ;;  %v365_v25 = vsub.f32 %v2691_v16, %v3470_v55 }
  0x5b   :  { %v240_v31 = vand.u32 4294901760, %v239_v11  ;;  %v2177_v4 = vpack.c.bf16 %v359_v28, %v352_v40  ;;  %v372_v32 = vsub.f32 %v2693_v21, %v3454_v19  ;;  %v1094_v24 = vsub.f32 %v2701_v37, %v3455_v46 }
  0x5c   :  { %v3460_v12 = vand.u32 4294901760, %v2703_v38  ;;  %v2360_v26 = vpack.c.bf16 %v1088_v20, %v1081_v39  ;;  %v247_v11 = vand.u32 4294901760, %v246_v22  ;;  %v366_v15 = vand.u32 4294901760, %v365_v25 }
  0x5d   :  { %v3458_v45 = vand.u32 4294901760, %v2707_v51  ;;  %2178 = vmatprep.subr.bf16.mxu1 %v2177_v4  ;;  %v373_v1 = vand.u32 4294901760, %v372_v32  ;;  %v1095_v17 = vand.u32 4294901760, %v1094_v24  ;;  %v3456_v28 = vand.u32 4294901760, %v2709_v53 }
  0x5e   :  { %v1101_v40 = vsub.f32 %v2703_v38, %v3460_v12  ;;  %2361 = vmatpush3.bf16.msra.mxu0 %v2360_v26  ;;  %v2179_v19 = vpack.c.bf16 %v247_v11, %v240_v31  ;;  %v3457_v22 = vand.u32 4294901760, %v2713_v56  ;;  %v3459_v25 = vand.u32 4294901760, %v2717_v60 }
  0x5f   :  { %v253_v46 = vsub.f32 %v2707_v51, %v3458_v45  ;;  %2362 = vmatprep.subr.bf16.mxu0 %v3511_v44  ;;  %v2181_v4 = vpack.c.bf16 %v373_v1, %v366_v15  ;;  %v260_v20 = vsub.f32 %v2709_v53, %v3456_v28  ;;  %v3469_v32 = vand.u32 4294901760, %v2721_v3 }
  0x60   :  { %v1102_v39 = vand.u32 4294901760, %v1101_v40  ;;  %2180 = vmatpush3.bf16.msra.mxu1 %v2179_v19  ;;  %v379_v24 = vsub.f32 %v2713_v56, %v3457_v22  ;;  %v386_v26 = vsub.f32 %v2717_v60, %v3459_v25  ;;  %v3463_v11 = vand.u32 4294901760, %v2725_v5 }
  0x61   :  { %v254_v31 = vand.u32 4294901760, %v253_v46  ;;  %2182 = vmatprep.subr.bf16.mxu1 %v2181_v4  ;;  %v261_v1 = vand.u32 4294901760, %v260_v20  ;;  %v1108_v40 = vsub.f32 %v2721_v3, %v3469_v32  ;;  %v3461_v19 = vand.u32 4294901760, %v2727_v30 }
  0x62   :  { %v2363_v15 = vpack.c.bf16 %v1102_v39, %v1095_v17  ;;  %v380_v46 = vand.u32 4294901760, %v379_v24  ;;  %v387_v28 = vand.u32 4294901760, %v386_v26  ;;  %v1115_v22 = vsub.f32 %v2725_v5, %v3463_v11 }
  0x63   :  { %v3462_v45 = vand.u32 4294901760, %v2731_v36  ;;  %v2183_v25 = vpack.c.bf16 %v261_v1, %v254_v31  ;;  %v1109_v12 = vand.u32 4294901760, %v1108_v40  ;;  %v267_v17 = vsub.f32 %v2727_v30, %v3461_v19 }
  0x64   :  { %2364 = vmatpush3.bf16.msra.mxu0 %v2363_v15  ;;  %v3464_v4 = vand.u32 4294901760, %v2735_v13  ;;  %v2185_v39 = vpack.c.bf16 %v387_v28, %v380_v46  ;;  %v1116_v20 = vand.u32 4294901760, %v1115_v22  ;;  %v3465_v26 = vand.u32 4294901760, %v2738_v35  ;;  %v3537_v46 = vld [vmem:[#allocation32_spill] sm:$0xff] }
  0x65   :  { %2365 = vmatprep.subr.bf16.mxu0 %v3511_v44  ;;  %v274_v24 = vsub.f32 %v2731_v36, %v3462_v45  ;;  %2184 = vmatpush3.bf16.msra.mxu1 %v2183_v25  ;;  %v268_v15 = vand.u32 4294901760, %v267_v17  ;;  %v3466_v1 = vand.u32 4294901760, %v2742_v7  ;;  %v3467_v40 = vand.u32 4294901760, %v2744_v62 }
  0x66   :  { %v393_v31 = vsub.f32 %v2735_v13, %v3464_v4  ;;  %2186 = vmatprep.subr.bf16.mxu1 %v2185_v39  ;;  %v2366_v19 = vpack.c.bf16 %v1116_v20, %v1109_v12  ;;  %v400_v22 = vsub.f32 %v2738_v35, %v3465_v26  ;;  %v3468_v45 = vand.u32 4294901760, %v3537_v46 }
  0x67   :  { %v275_v28 = vand.u32 4294901760, %v274_v24  ;;  %v1122_v25 = vsub.f32 %v2742_v7, %v3466_v1  ;;  %v1129_v17 = vsub.f32 %v2744_v62, %v3467_v40  ;;  %v3473_v4 = vand.u32 4294901760, %v2753_v58 }
  0x68   :  { %v394_v11 = vand.u32 4294901760, %v393_v31  ;;  %2367 = vmatpush3.bf16.msra.mxu0 %v2366_v19  ;;  %v401_v39 = vand.u32 4294901760, %v400_v22  ;;  %v281_v20 = vsub.f32 %v3537_v46, %v3468_v45  ;;  %v3474_v24 = vand.u32 4294901760, %v2757_v33  ;;  %v3538_v22 = vld [vmem:[#allocation36_spill] sm:$0xff] }
  0x69   :  { %v2187_v12 = vpack.c.bf16 %v275_v28, %v268_v15  ;;  %2368 = vmatprep.subr.bf16.mxu0 %v3511_v44  ;;  %v1123_v31 = vand.u32 4294901760, %v1122_v25  ;;  %v1130_v26 = vand.u32 4294901760, %v1129_v17  ;;  %v288_v1 = vsub.f32 %v2753_v58, %v3473_v4  ;;  %v3539_v17 = vld [vmem:[#allocation37_spill] sm:$0xff] }
  0x6a   :  { %v3475_v40 = vand.u32 4294901760, %v2760_v0  ;;  %v2189_v19 = vpack.c.bf16 %v401_v39, %v394_v11  ;;  %v282_v15 = vand.u32 4294901760, %v281_v20  ;;  %v407_v28 = vsub.f32 %v2757_v33, %v3474_v24  ;;  %v3540_v39 = vld [vmem:[#allocation40_spill] sm:$0xff] }
  0x6b   :  { %2188 = vmatpush3.bf16.msra.mxu1 %v2187_v12  ;;  %v3476_v45 = vand.u32 4294901760, %v3538_v22  ;;  %v2369_v32 = vpack.c.bf16 %v1130_v26, %v1123_v31  ;;  %v289_v55 = vand.u32 4294901760, %v288_v1  ;;  %v3477_v34 = vand.u32 4294901760, %v3539_v17  ;;  %v3541_v31 = vld [vmem:[#allocation41_spill] sm:$0xff] }
  0x6c   :  { %v414_v25 = vsub.f32 %v2760_v0, %v3475_v40  ;;  %2190 = vmatprep.subr.bf16.mxu1 %v2189_v19  ;;  %v408_v4 = vand.u32 4294901760, %v407_v28  ;;  %v3479_v12 = vand.u32 4294901760, %v2772_v6  ;;  %v3482_v20 = vand.u32 4294901760, %v3540_v39 }
  0x6d   :  { %v1136_v11 = vsub.f32 %v3538_v22, %v3476_v45  ;;  %2370 = vmatpush3.bf16.msra.mxu0 %v2369_v32  ;;  %v2191_v24 = vpack.c.bf16 %v289_v55, %v282_v15  ;;  %v1143_v1 = vsub.f32 %v3539_v17, %v3477_v34  ;;  %v3487_v40 = vand.u32 4294901760, %v3541_v31 }
  0x6e   :  { %v415_v26 = vand.u32 4294901760, %v414_v25  ;;  %2371 = vmatprep.subr.bf16.mxu0 %v3511_v44  ;;  %v295_v28 = vsub.f32 %v2772_v6, %v3479_v12  ;;  %v302_v45 = vsub.f32 %v3540_v39, %v3482_v20  ;;  %v3484_v55 = vand.u32 4294901760, %v2786_v49 }
  0x6f   :  { %v1137_v19 = vand.u32 4294901760, %v1136_v11  ;;  %2192 = vmatpush3.bf16.msra.mxu1 %v2191_v24  ;;  %v1144_v15 = vand.u32 4294901760, %v1143_v1  ;;  %v421_v25 = vsub.f32 %v3541_v31, %v3487_v40  ;;  %v3486_v34 = vand.u32 4294901760, %v2790_v23  ;;  %v3544_v40 = vld [vmem:[#allocation16_spill] sm:$0xff] }
  0x70   :  { %v2193_v32 = vpack.c.bf16 %v415_v26, %v408_v4  ;;  %v296_v11 = vand.u32 4294901760, %v295_v28  ;;  %v303_v17 = vand.u32 4294901760, %v302_v45  ;;  %v428_v12 = vsub.f32 %v2786_v49, %v3484_v55 }
  0x71   :  { %v3485_v6 = vand.u32 4294901760, %v2794_v47  ;;  %v2372_v20 = vpack.c.bf16 %v1144_v15, %v1137_v19  ;;  %v422_v39 = vand.u32 4294901760, %v421_v25  ;;  %v1150_v4 = vsub.f32 %v2790_v23, %v3486_v34 }
  0x72   :  { %2194 = vmatprep.subr.bf16.mxu1 %v2193_v32  ;;  %v3490_v24 = vand.u32 4294901760, %v2798_v9  ;;  %v2195_v26 = vpack.c.bf16 %v303_v17, %v296_v11  ;;  %v429_v1 = vand.u32 4294901760, %v428_v12  ;;  %v315_v28 = vand.u32 4294901760, %v2802_v57 }
  0x73   :  { %v1157_v45 = vsub.f32 %v2794_v47, %v3485_v6  ;;  %2373 = vmatpush3.bf16.msra.mxu0 %v2372_v20  ;;  %v1151_v55 = vand.u32 4294901760, %v1150_v4  ;;  %v3542_v6 = vld [vmem:[#allocation13_spill] sm:$0xff]  ;;  %v3543_v4 = vld [vmem:[#allocation14_spill] sm:$0xff] }
  0x74   :  { %v309_v19 = vsub.f32 %v2798_v9, %v3490_v24  ;;  %2196 = vmatpush3.bf16.msra.mxu1 %v2195_v26  ;;  %2374 = vmatprep.subr.bf16.mxu0 %v3511_v44  ;;  %v2197_v32 = vpack.c.bf16 %v429_v1, %v422_v39  ;;  %v316_v17 = vsub.f32 %v2802_v57, %v315_v28  ;;  %v3551_v24 = vand.u32 4294901760, %v2643_v29 }
  0x75   :  { %v1158_v15 = vand.u32 4294901760, %v1157_v45  ;;  %v2201_v34 = vpack.c.bf16 %v3542_v6, %v2628_v18  ;;  %v2378_v47 = vpack.c.bf16 %v3544_v40, %v3543_v4  ;;  %v2203_v39 = vpack.c.bf16 %v2643_v29, %v2640_v27 }
  0x76   :  { %v310_v12 = vand.u32 4294901760, %v309_v19  ;;  %2198 = vmatprep.subr.bf16.mxu1 %v2197_v32  ;;  %v317_v11 = vand.u32 4294901760, %v316_v17  ;;  %v2205_v26 = vpack.c.bf16 %v2652_v42, %v2650_v41  ;;  %v2207_v1 = vpack.c.bf16 %v2665_v52, %v2662_v50  ;;  %v3545_v19 = vld [vmem:[#allocation49_spill] sm:$0xff] }
  0x77   :  { %v2375_v25 = vpack.c.bf16 %v1158_v15, %v1151_v55  ;;  %v2381_v55 = vpack.c.bf16 %v2658_v48, %v2654_v43  ;;  %v2209_v45 = vpack.c.bf16 %v2674_v63, %v2667_v54  ;;  %v2384_v32 = vpack.c.bf16 %v2680_v8, %v2676_v2 }
  0x78   :  { %v2199_v20 = vpack.c.bf16 %v317_v11, %v310_v12  ;;  %v3546_v15 = vand.u32 4294901760, %v2628_v18  ;;  %v3547_v17 = vand.u32 4294901760, %v3542_v6  ;;  %v3549_v11 = vand.u32 4294901760, %v3544_v40 }
  0x79   :  { %2376 = vmatpush3.bf16.msra.mxu0 %v2375_v25  ;;  %v3548_v25 = vand.u32 4294901760, %v3543_v4  ;;  %v3552_v18 = vand.u32 4294901760, %v2650_v41  ;;  %v3553_v6 = vand.u32 4294901760, %v2652_v42  ;;  %v3554_v40 = vand.u32 4294901760, %v2654_v43 }
  0x7a   :  { %2377 = vmatprep.subr.bf16.mxu0 %v3511_v44  ;;  %2200 = vmatpush3.bf16.msra.mxu1 %v2199_v20  ;;  %v3051_v12 = vpack.c.bf16 %v3547_v17, %v3546_v15  ;;  %v3555_v4 = vand.u32 4294901760, %v2658_v48  ;;  %v3556_v17 = vld [vmem:[#allocation43_spill] sm:$0xff]  ;;  %v3558_v29 = vand.u32 4294901760, %v2665_v52  ;;  %v3559_v41 = vand.u32 4294901760, %v2667_v54 }
  0x7b   :  { %2202 = vmatprep.subr.bf16.mxu1 %v2201_v34  ;;  %v3057_v20 = vpack.c.bf16 %v3549_v11, %v3548_v25  ;;  %v3550_v34 = vand.u32 4294901760, %v2640_v27  ;;  %v3071_v15 = vpack.c.bf16 %v3553_v6, %v3552_v18  ;;  %v3557_v27 = vand.u32 4294901760, %v2662_v50 }
  0x7c   :  { %1995 = vmatmul.mubr.f32.vlgmr.msra.gmra.mrb[0].mxu0 %v3545_v19  ;;  %v3560_v42 = vand.u32 4294901760, %v2674_v63  ;;  %v3561_v43 = vand.u32 4294901760, %v2676_v2  ;;  %v3562_v48 = vand.u32 4294901760, %v2680_v8  ;;  %v3563_v50 = vand.u32 4294901760, %v2684_v10 }
  0x7d   :  { %2379 = vmatpush3.bf16.msra.mxu0 %v2378_v47  ;;  %2029 = vmatprep.mubr.msk.f32.mxu0 %vm2569_vm0, %v3536_v61  ;;  %v3065_v19 = vpack.c.bf16 %v3551_v24, %v3550_v34  ;;  %v3077_v47 = vpack.c.bf16 %v3555_v4, %v3554_v40  ;;  %v3085_v24 = vpack.c.bf16 %v3558_v29, %v3557_v27  ;;  %v3564_v52 = vand.u32 4294901760, %v2687_v14 }
  0x7e   :  { %434 = vmatmul.mubr.f32.vlgmr.msra.gmra.mrb[2].mxu1 %v3556_v17  ;;  %2380 = vmatprep.subr.bf16.mxu0 %v3511_v44  ;;  %v3091_v25 = vpack.c.bf16 %v3560_v42, %v3559_v41  ;;  %v3097_v11 = vpack.c.bf16 %v3562_v48, %v3561_v43  ;;  %v3565_v54 = vand.u32 4294901760, %v2691_v16  ;;  %v3566_v63 = vand.u32 4294901760, %v2693_v21 }
  0x7f   :  { %2204 = vmatpush3.bf16.msra.mxu1 %v2203_v39  ;;  %569 = vmatprep.mubr.f32.mxu1 %v2805_v59  ;;  %v3104_v34 = vpack.c.bf16 %v3564_v52, %v3563_v50  ;;  %v3567_v2 = vand.u32 4294901760, %v2701_v37  ;;  %v3568_v8 = vand.u32 4294901760, %v2703_v38  ;;  %v3569_v39 = vand.u32 4294901760, %v2707_v51 }
  0x80   :  { %v3110_v18 = vpack.c.bf16 %v3566_v63, %v3565_v54  ;;  %2206 = vmatprep.subr.bf16.mxu1 %v2205_v26  ;;  %v3570_v40 = vand.u32 4294901760, %v2709_v53  ;;  %v3571_v27 = vand.u32 4294901760, %v2713_v56  ;;  %v3572_v29 = vand.u32 4294901760, %v2717_v60 }
  0x81   :  { %v3116_v6 = vpack.c.bf16 %v3568_v8, %v3567_v2  ;;  %v3573_v42 = vand.u32 4294901760, %v2721_v3  ;;  %v3574_v43 = vand.u32 4294901760, %v2725_v5  ;;  %v3576_v26 = vand.u32 4294901760, %v2727_v30  ;;  %2382 = vmatpush3.bf16.msra.mxu0 %v2381_v55 }
  0x82   :  { %v3122_v4 = vpack.c.bf16 %v3570_v40, %v3569_v39  ;;  %v3128_v41 = vpack.c.bf16 %v3572_v29, %v3571_v27  ;;  %v3577_v50 = vand.u32 4294901760, %v2731_v36  ;;  %v3579_v54 = vand.u32 4294901760, %v2735_v13  ;;  %2383 = vmatprep.subr.bf16.mxu0 %v3511_v44 }
  0x83   :  { %v3134_v48 = vpack.c.bf16 %v3574_v43, %v3573_v42  ;;  %v3580_v63 = vand.u32 4294901760, %v2738_v35  ;;  %v3582_v8 = vand.u32 4294901760, %v2742_v7  ;;  %v3583_v39 = vand.u32 4294901760, %v2744_v62  ;;  %2208 = vmatpush3.bf16.msra.mxu1 %v2207_v1 }
  0x84   :  { %v3140_v52 = vpack.c.bf16 %v3577_v50, %v3576_v26  ;;  %v3585_v27 = vand.u32 4294901760, %v3537_v46  ;;  %v3586_v29 = vand.u32 4294901760, %v2753_v58  ;;  %v3588_v55 = vand.u32 4294901760, %v2757_v33  ;;  %2210 = vmatprep.subr.bf16.mxu1 %v2209_v45  ;;  %v3622_v45 = vld [vmem:[#allocation30_spill] sm:$0xff] }
  0x85   :  { %3575 = vst [vmem:[#allocation32_spill] sm:$0xff] %v3134_v48  ;;  %v3146_v2 = vpack.c.bf16 %v3580_v63, %v3579_v54  ;;  %v3152_v40 = vpack.c.bf16 %v3583_v39, %v3582_v8  ;;  %v3589_v43 = vand.u32 4294901760, %v2760_v0  ;;  %v3591_v50 = vand.u32 4294901760, %v3538_v22  ;;  %v3592_v54 = vld [vmem:[#allocation37_spill] sm:$0xff]  ;;  %v3594_v39 = vld [vmem:[#allocation39_spill] sm:$0xff]  ;;  %2385 = vmatpush3.bf16.msra.mxu0 %v2384_v32 }
  0x86   :  { %3578 = vst [vmem:[#allocation36_spill] sm:$0xff] %v3140_v52  ;;  %v3158_v42 = vpack.c.bf16 %v3586_v29, %v3585_v27  ;;  %v3593_v63 = vand.u32 4294901760, %v3592_v54  ;;  %v3595_v17 = vand.u32 4294901760, %v3594_v39  ;;  %v3598_v29 = vand.u32 4294901760, %v3541_v31  ;;  %2386 = vmatprep.subr.bf16.mxu0 %v3511_v44  ;;  %v3623_v32 = vld [vmem:[#allocation31_spill] sm:$0xff] }
  0x87   :  { %3581 = vst [vmem:[#allocation41_spill] sm:$0xff] %v3146_v2  ;;  %3584 = vst [vmem:[#allocation13_spill] sm:$0xff] %v3152_v40  ;;  %v3164_v26 = vpack.c.bf16 %v3589_v43, %v3588_v55  ;;  %v3596_v40 = vld [vmem:[#allocation40_spill] sm:$0xff]  ;;  %v3600_v43 = vand.u32 4294901760, %v2790_v23  ;;  %v2215_v1 = vpack.c.bf16 %v2709_v53, %v2707_v51  ;;  %v2225_v51 = vpack.c.bf16 %v2760_v0, %v2757_v33  ;;  %v3610_v33 = vld [vmem:[#allocation18_spill] sm:$0xff] }
  0x88   :  { %3587 = vst [vmem:[#allocation14_spill] sm:$0xff] %v3158_v42  ;;  %v3171_v8 = vpack.c.bf16 %v3593_v63, %v3591_v50  ;;  %v3597_v2 = vand.u32 4294901760, %v3596_v40  ;;  %v3599_v42 = vand.u32 4294901760, %v2786_v49  ;;  %v2211_v50 = vpack.c.bf16 %v2687_v14, %v2684_v10 }
  0x89   :  { %3590 = vst [vmem:[#allocation16_spill] sm:$0xff] %v3164_v26  ;;  %v3601_v26 = vld [vmem:[#allocation46_spill] sm:$0xff]  ;;  %v3603_v63 = vand.u32 4294901760, %v2798_v9  ;;  %v2217_v10 = vpack.c.bf16 %v2717_v60, %v2713_v56  ;;  %v2390_v14 = vpack.c.bf16 %v2725_v5, %v2721_v3  ;;  %v2231_v0 = vpack.c.bf16 %v2802_v57, %v2798_v9  ;;  %v3604_v56 = vld [vmem:[#allocation12_spill] sm:$0xff]  ;;  %v3606_v3 = vld [vmem:[#allocation15_spill] sm:$0xff] }
  0x8a   :  { %v3177_v27 = vpack.c.bf16 %v3597_v2, %v3595_v17  ;;  %v3183_v55 = vpack.c.bf16 %v3599_v42, %v3598_v29  ;;  %v3602_v52 = vand.u32 4294901760, %v3601_v26  ;;  %v2213_v2 = vpack.c.bf16 %v2693_v21, %v2691_v16  ;;  %2212 = vmatpush3.bf16.msra.mxu1 %v2211_v50  ;;  %v3605_v60 = vld [vmem:[#allocation50_spill] sm:$0xff]  ;;  %v3607_v5 = vld [vmem:[#allocation48_spill] sm:$0xff]  ;;  %v3629_v29 = vld [vmem:[#allocation45_spill] sm:$0xff] }
  0x8b   :  { %v3195_v17 = vpack.c.bf16 %v315_v28, %v3603_v63  ;;  %v2387_v42 = vpack.c.bf16 %v2703_v38, %v2701_v37  ;;  %v2219_v16 = vpack.c.bf16 %v2731_v36, %v2727_v30  ;;  %v2221_v21 = vpack.c.bf16 %v2738_v35, %v2735_v13  ;;  %v3608_v30 = vld [vmem:[#allocation17_spill] sm:$0xff]  ;;  %v3611_v13 = vld [vmem:[#allocation19_spill] sm:$0xff]  ;;  %v3612_v35 = vld [vmem:[#allocation20_spill] sm:$0xff] }
  0x8c   :  { %v3189_v48 = vpack.c.bf16 %v3602_v52, %v3600_v43  ;;  %2214 = vmatprep.subr.bf16.mxu1 %v2213_v2  ;;  %v2393_v37 = vpack.c.bf16 %v2744_v62, %v2742_v7  ;;  %v2223_v38 = vpack.c.bf16 %v2753_v58, %v3537_v46  ;;  %v2396_v36 = vpack.c.bf16 %v3592_v54, %v3538_v22  ;;  %v3613_v58 = vld [vmem:[#allocation21_spill] sm:$0xff]  ;;  %v3616_v57 = vld [vmem:[#allocation24_spill] sm:$0xff]  ;;  %v3618_v46 = vld [vmem:[#allocation26_spill] sm:$0xff] }
  0x8d   :  { %2388 = vmatpush3.bf16.msra.mxu0 %v2387_v42  ;;  %v2227_v62 = vpack.c.bf16 %v3596_v40, %v3594_v39  ;;  %v2229_v7 = vpack.c.bf16 %v2786_v49, %v3541_v31  ;;  %v2399_v53 = vpack.c.bf16 %v3601_v26, %v2790_v23  ;;  %v3609_v9 = vand.u32 4294901760, %v2805_v59  ;;  %v3614_v49 = vld [vmem:[#allocation22_spill] sm:$0xff]  ;;  %v3615_v23 = vld [vmem:[#allocation23_spill] sm:$0xff]  ;;  %v3617_v59 = vld [vmem:[#allocation25_spill] sm:$0xff] }
  0x8e   :  { %2389 = vmatprep.subr.bf16.mxu0 %v3511_v44  ;;  %2216 = vmatpush3.bf16.msra.mxu1 %v2215_v1  ;;  %v3619_v22 = vld [vmem:[#allocation27_spill] sm:$0xff]  ;;  %v3620_v31 = vld [vmem:[#allocation28_spill] sm:$0xff]  ;;  %v3621_v28 = vld [vmem:[#allocation29_spill] sm:$0xff]  ;;  %v3631_v50 = vand.u32 4294901760, %v3605_v60  ;;  %v3632_v63 = vand.u32 4294901760, %v3607_v5 }
  0x8f   :  { %2218 = vmatprep.subr.bf16.mxu1 %v2217_v10  ;;  %v3624_v52 = vld [vmem:[#allocation33_spill] sm:$0xff]  ;;  %v3625_v40 = vld [vmem:[#allocation34_spill] sm:$0xff]  ;;  %v3626_v26 = vld [vmem:[#allocation35_spill] sm:$0xff] }
  0x90   :  { %v3627_v54 = vld [vmem:[#allocation38_spill] sm:$0xff]  ;;  %v3628_v39 = vld [vmem:[#allocation44_spill] sm:$0xff]  ;;  %v3630_v43 = vld [vmem:[#allocation47_spill] sm:$0xff] }
  0x91   :  { %2391 = vmatpush3.bf16.msra.mxu0 %v2390_v14  ;;  %v3633_v2 = vld [vmem:[#allocation42_spill] sm:$0xff] }
  0x92   :  { %2392 = vmatprep.subr.bf16.mxu0 %v3511_v44  ;;  %2220 = vmatpush3.bf16.msra.mxu1 %v2219_v16 }
  0x93   :  { %2222 = vmatprep.subr.bf16.mxu1 %v2221_v21 }
  0x95   :  { %2394 = vmatpush3.bf16.msra.mxu0 %v2393_v37 }
  0x96   :  { %2395 = vmatprep.subr.bf16.mxu0 %v3511_v44  ;;  %2224 = vmatpush3.bf16.msra.mxu1 %v2223_v38 }
  0x97   :  { %2226 = vmatprep.subr.bf16.mxu1 %v2225_v51 }
  0x99   :  { %2397 = vmatpush3.bf16.msra.mxu0 %v2396_v36 }
  0x9a   :  { %2398 = vmatprep.subr.bf16.mxu0 %v3511_v44  ;;  %2228 = vmatpush3.bf16.msra.mxu1 %v2227_v62 }
  0x9b   :  { %2230 = vmatprep.subr.bf16.mxu1 %v2229_v7 }
  0x9d   :  { %2400 = vmatpush3.bf16.msra.mxu0 %v2399_v53 }
  0x9e   :  { %2401 = vmatprep.subr.bf16.mxu0 %v3511_v44  ;;  %2232 = vmatpush3.bf16.msra.mxu1 %v2231_v0 }
  0x9f   :  { %2234 = vmatprep.subr.bf16.mxu1 %v3604_v56 }
  0xa0   :  { %2030 = vmatmul.mubr.f32.vlgmr.msra.gmra.mrb[0].mxu0 %v3605_v60 }
  0xa1   :  { %2403 = vmatpush3.bf16.msra.mxu0 %v3606_v3  ;;  %2064 = vmatprep.mubr.msk.f32.mxu0 %vm2569_vm0, %v3536_v61 }
  0xa2   :  { %572 = vmatmul.mubr.f32.vlgmr.msra.gmra.mrb[4].mxu1 %v3607_v5  ;;  %2404 = vmatprep.subr.bf16.mxu0 %v3511_v44 }
  0xa3   :  { %2236 = vmatpush3.bf16.msra.mxu1 %v3608_v30  ;;  %676 = vmatprep.mubr.f32.mxu1 %v3609_v9 }
  0xa4   :  { %2238 = vmatprep.subr.bf16.mxu1 %v3610_v33 }
  0xa5   :  { %2406 = vmatpush3.bf16.msra.mxu0 %v3611_v13 }
  0xa6   :  { %2407 = vmatprep.subr.bf16.mxu0 %v3511_v44 }
  0xa7   :  { %2240 = vmatpush3.bf16.msra.mxu1 %v3612_v35 }
  0xa8   :  { %2242 = vmatprep.subr.bf16.mxu1 %v3613_v58 }
  0xa9   :  { %2409 = vmatpush3.bf16.msra.mxu0 %v3614_v49 }
  0xaa   :  { %2410 = vmatprep.subr.bf16.mxu0 %v3511_v44 }
  0xab   :  { %2244 = vmatpush3.bf16.msra.mxu1 %v3615_v23 }
  0xac   :  { %2246 = vmatprep.subr.bf16.mxu1 %v3616_v57 }
  0xad   :  { %2412 = vmatpush3.bf16.msra.mxu0 %v3617_v59 }
  0xae   :  { %2413 = vmatprep.subr.bf16.mxu0 %v3511_v44 }
  0xaf   :  { %2248 = vmatpush3.bf16.msra.mxu1 %v3618_v46 }
  0xb0   :  { %2250 = vmatprep.subr.bf16.mxu1 %v3619_v22 }
  0xb1   :  { %2415 = vmatpush3.bf16.msra.mxu0 %v3620_v31 }
  0xb2   :  { %2416 = vmatprep.subr.bf16.mxu0 %v3511_v44 }
  0xb3   :  { %2252 = vmatpush3.bf16.msra.mxu1 %v3621_v28 }
  0xb4   :  { %2254 = vmatprep.subr.bf16.mxu1 %v3622_v45 }
  0xb5   :  { %2418 = vmatpush3.bf16.msra.mxu0 %v3623_v32 }
  0xb6   :  { %2419 = vmatprep.subr.bf16.mxu0 %v3511_v44 }
  0xb7   :  { %2256 = vmatpush3.bf16.msra.mxu1 %v3624_v52 }
  0xb8   :  { %2258 = vmatprep.subr.bf16.mxu1 %v3625_v40 }
  0xb9   :  { %2421 = vmatpush3.bf16.msra.mxu0 %v3626_v26 }
  0xba   :  { %2422 = vmatprep.subr.bf16.mxu0 %v3511_v44 }
  0xbb   :  { %2260 = vmatpush3.bf16.msra.mxu1 %v3627_v54 }
  0xbc   :  { %2262 = vmatprep.subr.bf16.mxu1 %v3628_v39 }
  0xbd   :  { %2424 = vmatpush3.bf16.msra.mxu0 %v3629_v29 }
  0xbe   :  { %2425 = vmatprep.subr.bf16.mxu0 %v3511_v44 }
  0xbf   :  { %2264 = vmatpush3.bf16.msra.mxu1 %v3630_v43 }
  0xc0   :  { %2266 = vmatprep.subr.bf16.mxu1 %v3051_v12  ;;  %2065 = vmatmul.mubr.f32.vlgmr.msra.gmra.mrb[0].mxu0 %v3631_v50  ;;  %v3635_v12 = vld [vmem:[#allocation36_spill] sm:$0xff] }
  0xc1   :  { %2427 = vmatpush3.bf16.msra.mxu0 %v3057_v20  ;;  %2099 = vmatprep.mubr.msk.f32.mxu0 %vm2569_vm0, %v3536_v61  ;;  %v3636_v20 = vld [vmem:[#allocation41_spill] sm:$0xff] }
  0xc2   :  { %680 = vmatmul.mubr.f32.vlgmr.msra.gmra.mrb[6].mxu1 %v3632_v63  ;;  %2428 = vmatprep.subr.bf16.mxu0 %v3511_v44 }
  0xc3   :  { %2268 = vmatpush3.bf16.msra.mxu1 %v3065_v19  ;;  %846 = vmatprep.mubr.f32.mxu1 %v3633_v2  ;;  %v3634_v19 = vld [vmem:[#allocation32_spill] sm:$0xff] }
  0xc4   :  { %2270 = vmatprep.subr.bf16.mxu1 %v3071_v15  ;;  %v3637_v15 = vld [vmem:[#allocation13_spill] sm:$0xff] }
  0xc5   :  { %2430 = vmatpush3.bf16.msra.mxu0 %v3077_v47  ;;  %v3638_v47 = vld [vmem:[#allocation14_spill] sm:$0xff] }
  0xc6   :  { %2431 = vmatprep.subr.bf16.mxu0 %v3511_v44 }
  0xc7   :  { %2272 = vmatpush3.bf16.msra.mxu1 %v3085_v24  ;;  %v3639_v24 = vld [vmem:[#allocation16_spill] sm:$0xff] }
  0xc8   :  { %2274 = vmatprep.subr.bf16.mxu1 %v3091_v25  ;;  %v3640_v25 = vld [vmem:[#allocation49_spill] sm:$0xff] }
  0xc9   :  { %2433 = vmatpush3.bf16.msra.mxu0 %v3097_v11  ;;  %v3641_v11 = vld [vmem:[#allocation43_spill] sm:$0xff] }
  0xca   :  { %2434 = vmatprep.subr.bf16.mxu0 %v3511_v44 }
  0xcb   :  { %2276 = vmatpush3.bf16.msra.mxu1 %v3104_v34 }
  0xcc   :  { %2278 = vmatprep.subr.bf16.mxu1 %v3110_v18 }
  0xcd   :  { %2436 = vmatpush3.bf16.msra.mxu0 %v3116_v6  ;;  %v94_v6 = vstv %s3365_s2  ;;  %s2571_s2 = smov [#allocation8]  }
  0xce   :  { %2437 = vmatprep.subr.bf16.mxu0 %v3511_v44  ;;  %s1605_s11 = sshll.u32 %s2571_s2, 4  ;;  %s1606_s11 = int_to_ptr.vmem [resolvable:$true] %s1605_s11 }
  0xcf   :  { %2280 = vmatpush3.bf16.msra.mxu1 %v3122_v4  ;;  %s2536_s12 = scalar_lea.vmem %s1606_s11, 128  ;;  %p2541_p3 = scmp.lt.s32.totalorder %s1606_s11, %s1606_s11 }
  0xd0   :  { %2282 = vmatprep.subr.bf16.mxu1 %v3128_v41  ;;  %p2537_p2 = scmp.ne.s32.totalorder %s1606_s11, %s2536_s12  ;;  %p2542_p4 = scmp.lt.s32.totalorder %s2536_s12, %s2536_s12 }
  0xd1   :  { %2439 = vmatpush3.bf16.msra.mxu0 %v3634_v19 }
  0xd2   :  { %2440 = vmatprep.subr.bf16.mxu0 %v3511_v44  ;;  %p2543_p5 = por %p2542_p4, %p2541_p3 }
  0xd3   :  { %2284 = vmatpush3.bf16.msra.mxu1 %v3635_v12 }
  0xd4   :  { %2286 = vmatprep.subr.bf16.mxu1 %v3636_v20  ;;  %p2544_p6 = pnand %p2543_p5, %p2537_p2 }
  0xd5   :  { %2442 = vmatpush3.bf16.msra.mxu0 %v3637_v15 }
  0xd6   :  { %2443 = vmatprep.subr.bf16.mxu0 %v3511_v44 }
  0xd7   :  { %2288 = vmatpush3.bf16.msra.mxu1 %v3638_v47 }
  0xd8   :  { %2290 = vmatprep.subr.bf16.mxu1 %v3639_v24 }
  0xd9   :  { %2445 = vmatpush3.bf16.msra.mxu0 %v3171_v8 }
  0xda   :  { %2446 = vmatprep.subr.bf16.mxu0 %v3511_v44 }
  0xdb   :  { %2292 = vmatpush3.bf16.msra.mxu1 %v3177_v27 }
  0xdc   :  { %2294 = vmatprep.subr.bf16.mxu1 %v3183_v55 }
  0xdd   :  { %2448 = vmatpush3.bf16.msra.mxu0 %v3189_v48 }
  0xde   :  { %2449 = vmatprep.subr.bf16.mxu0 %v3511_v44 }
  0xdf   :  { %2296 = vmatpush3.bf16.msra.mxu1 %v3195_v17 }
  0xe0   :  { %2298 = vmatprep.subr.bf16.mxu1 %v3604_v56  ;;  %2100 = vmatmul.mubr.f32.vlgmr.msra.gmra.mrb[0].mxu0 %v3640_v25 }
  0xe1   :  { %2451 = vmatpush3.bf16.msra.mxu0 %v3606_v3  ;;  %2134 = vmatprep.mubr.msk.f32.mxu0 %vm2569_vm0, %v3536_v61 }
  0xe2   :  { %848 = vmatmul.mubr.f32.vlgmr.msra.gmra.mrb[8].mxu1 %v3641_v11  ;;  %2452 = vmatprep.subr.bf16.mxu0 %v3511_v44 }
  0xe3   :  { %2300 = vmatpush3.bf16.msra.mxu1 %v3608_v30  ;;  %950 = vmatprep.mubr.f32.mxu1 %v3633_v2 }
  0xe4   :  { %2302 = vmatprep.subr.bf16.mxu1 %v3610_v33 }
  0xe5   :  { %2454 = vmatpush3.bf16.msra.mxu0 %v3611_v13 }
  0xe6   :  { %2455 = vmatprep.subr.bf16.mxu0 %v3511_v44 }
  0xe7   :  { %2304 = vmatpush3.bf16.msra.mxu1 %v3612_v35 }
  0xe8   :  { %2306 = vmatprep.subr.bf16.mxu1 %v3613_v58 }
  0xe9   :  { %2457 = vmatpush3.bf16.msra.mxu0 %v3614_v49 }
  0xea   :  { %2458 = vmatprep.subr.bf16.mxu0 %v3511_v44 }
  0xeb   :  { %2308 = vmatpush3.bf16.msra.mxu1 %v3615_v23 }
  0xec   :  { %2310 = vmatprep.subr.bf16.mxu1 %v3616_v57 }
  0xed   :  { %2460 = vmatpush3.bf16.msra.mxu0 %v3617_v59 }
  0xee   :  { %2461 = vmatprep.subr.bf16.mxu0 %v3511_v44 }
  0xef   :  { %2312 = vmatpush3.bf16.msra.mxu1 %v3618_v46 }
  0xf0   :  { %2314 = vmatprep.subr.bf16.mxu1 %v3619_v22 }
  0xf1   :  { %2463 = vmatpush3.bf16.msra.mxu0 %v3620_v31 }
  0xf2   :  { %2464 = vmatprep.subr.bf16.mxu0 %v3511_v44 }
  0xf3   :  { %2316 = vmatpush3.bf16.msra.mxu1 %v3621_v28 }
  0xf4   :  { %2318 = vmatprep.subr.bf16.mxu1 %v3622_v45 }
  0xf5   :  { %2466 = vmatpush3.bf16.msra.mxu0 %v3623_v32 }
  0xf6   :  { %2467 = vmatprep.subr.bf16.mxu0 %v3511_v44 }
  0xf7   :  { %2320 = vmatpush3.bf16.msra.mxu1 %v3624_v52 }
  0xf8   :  { %2322 = vmatprep.subr.bf16.mxu1 %v3625_v40 }
  0xf9   :  { %2469 = vmatpush3.bf16.msra.mxu0 %v3626_v26 }
  0xfa   :  { %2470 = vmatprep.subr.bf16.mxu0 %v3511_v44 }
  0xfb   :  { %2324 = vmatpush3.bf16.msra.mxu1 %v3627_v54 }
  0xfc   :  { %2326 = vmatprep.subr.bf16.mxu1 %v3628_v39 }
  0xfd   :  { %2472 = vmatpush3.bf16.msra.mxu0 %v3629_v29 }
  0xff   :  { %2328 = vmatpush3.bf16.msra.mxu1 %v3630_v43 }
 0x100   :  { %2135 = vmatmul.mubr.f32.vlgmr.msra.gmra.mrb[0].mxu0 %v3640_v25 }
 0x102   :  { %952 = vmatmul.mubr.f32.vlgmr.msra.gmra.mrb[10].mxu1 %v3641_v11 }
 0x124   :  { %v1647_v61 = vpop.f32.mrb[0].mxu1 }
 0x125   :  { %v1648_v34 = vpop.f32.mrb[1].mxu1 }
 0x126   :  { %v1649_v18 = vadd.f32 %v1648_v34, %v1647_v61 }
 0x128   :  { %v204_v41 = vadd.f32 %v1649_v18, %v94_v6 }
 0x151   :  { %v1682_v44 = vpop.f32.mrb[2].mxu1 }
 0x152   :  { %v1683_v4 = vpop.f32.mrb[3].mxu1 }
 0x153   :  { %v1684_v48 = vadd.f32 %v1683_v4, %v1682_v44 }
 0x155   :  { %v436_v8 = vadd.f32 %v1684_v48, %v204_v41 }
 0x175   :  { %v1717_v27 = vpop.f32.mrb[4].mxu1 }
 0x176   :  { %v1718_v55 = vpop.f32.mrb[5].mxu1 }
 0x177   :  { %v1719_v17 = vadd.f32 %v1718_v55, %v1717_v27 }
 0x179   :  { %v574_v42 = vadd.f32 %v1719_v17, %v436_v8 }
 0x195   :  { %v1752_v1 = vpop.f32.mrb[6].mxu1 }
 0x196   :  { %v1753_v10 = vpop.f32.mrb[7].mxu1 }
 0x197   :  { %v1754_v14 = vadd.f32 %v1753_v10, %v1752_v1 }
 0x199   :  { %v682_v16 = vadd.f32 %v1754_v14, %v574_v42 }
 0x1b5   :  { %v1787_v21 = vpop.f32.mrb[8].mxu1 }
 0x1b6   :  { %v1788_v37 = vpop.f32.mrb[9].mxu1 }
 0x1b7   :  { %v1789_v38 = vadd.f32 %v1788_v37, %v1787_v21 }
 0x1b9   :  { %v850_v51 = vadd.f32 %v1789_v38, %v682_v16 }
 0x1d3   :  { %v1594_v36 = vpop.f32.mrb[0].mxu0 }
 0x1d4   :  { %v2136_v62 = vpop.f32.mrb[1].mxu0 }
 0x1d5   :  { %v1822_v7 = vpop.f32.mrb[10].mxu1 }
 0x1d6   :  { %v1823_v53 = vpop.f32.mrb[11].mxu1 }
 0x1d7   :  { %v1824_v0 = vadd.f32 %v1823_v53, %v1822_v7 }
 0x1d9   :  { %v954_v56 = vadd.f32 %v1824_v0, %v850_v51 }
 0x1db   :  { %v2473_v60 = vadd.f32 %v1594_v36, %v954_v56 }
 0x1dd   :  { %1598 = vst [vmem:[#allocation8] sm:$0xff] %v2473_v60 }
 0x1de   :  { %2547 = shalt.err (!%p2544_p6)
}
 0x1df   :  { %s2548_s15 = scalar_lea.hbm %s3366_s3, 128 }
 0x1e0   :  { %p2549_p7 = scmp.ne.s32.totalorder %s3366_s3, %s2548_s15  ;;  %p2552_p8 = scmp.lt.u32.totalorder %s2548_s15, %s3366_s3 }
 0x1e2   :  { %p2554_p9 = pnand %p2552_p8, %p2549_p7 }
 0x1e4   :  { %2557 = shalt.err (!%p2554_p9)
}
 0x1e5   :  { %1608 = dma.vmem_to_hbm [thread:$0]  %s1606_s11, 128, %s3366_s3, [#allocation5]  }
 0x1e6   :  { %2562 = dma.done.wait [#allocation5], 128  }
 0x1e7   :  { %2563 = vsyncadd [#allocation5], 4294967168 }
 0x1e8   :  { %1612 = vsyncpa [#allocation4], 1 }
 0x1e9   :  { %1613 = vsyncpa [#allocation7], 1 }
 0x1ea   :  { %1614 = vsyncpa [#allocation5], 1 }

</bundles_post_ra>
